<compile_context>
chip_gen: v5e
topology: v5e:2x2
jax: 0.10.0
libtpu: 0.0.40
codegen_flags: <defaults>
</compile_context>

<pallas_src>
import jax
import jax.numpy as jnp
from jax.experimental import pallas as pl
from jax.experimental.pallas import tpu as pltpu


# --------------------------------------------------------------------------
# Pallas kernel: elementwise ReLU on the current VMEM tile (VPU op).
# --------------------------------------------------------------------------
def _relu_kernel(x_ref, o_ref):
    o_ref[...] = jnp.maximum(x_ref[...], jnp.zeros((), dtype=x_ref.dtype))


# Inputs at or below this many bytes use a single whole-array block (one DMA
# in, one out, no grid).  Kept small so mid-size activations go through the
# tiled, "parallel" path (lets v7x's two TensorCores split the stream).
_SINGLE_BLOCK_BYTES = 1 << 20

# Widest lane-dense slab we form when the element count divides by 128.
_MAX_LANES = 2048

# Keep at least this many grid steps so the 2-TC split stays balanced and the
# double-buffer pipeline reaches steady state on mid-size inputs.
_MIN_GRID_STEPS = 8


def _tile_budget_bytes():
    """Per-tile byte budget for the tiled path.

    4 MiB is past the HBM-roofline knee on v5e/v6e and, double-buffered
    (in + out = 4 buffers = 16 MiB), fits every generation's scoped-VMEM
    limit once raised to 32 MiB.  On v7x-class parts (detected by their
    smaller 64 MiB VMEM) HBM is ~3.2 TB/s, so use 6 MiB tiles to amortize the
    ~0.35 us per-grid-step overhead (4 x 6 MiB = 24 MiB, still < 32 MiB).
    """
    tile = 4 << 20
    try:
        info = pltpu.get_tpu_info()
        if getattr(info, "vmem_capacity_bytes", 128 << 20) <= (64 << 20):
            tile = 6 << 20
    except Exception:
        tile = 4 << 20
    return tile


def _relu_forward(x, *, donate=False):
    """Elementwise ReLU of `x` computed by a Pallas TPU kernel."""
    orig_shape = x.shape
    dtype = x.dtype
    n = x.size
    if n == 0:
        return x

    itemsize = jnp.dtype(dtype).itemsize
    # Native packed tile height: 8 sublanes (32-bit), 16 (bf16), 32 (8-bit).
    sublane_min = max(8, 32 // itemsize)
    tile_bytes = _tile_budget_bytes()

    # ---- Copy-free 2-D view ------------------------------------------------
    use_pad = False
    if n % 128 == 0:
        # Lane-dense slab: widest power-of-two multiple of 128 dividing n.
        cols = 128
        while cols * 2 <= _MAX_LANES and n % (cols * 2) == 0:
            cols *= 2
    else:
        # Collapse trailing dims until the width reaches 128 (or runs out).
        # The BlockSpec's last dim will equal this full extent, so no padding
        # or slicing passes are needed; last-lane-group stores are masked.
        cols = 1
        for d in reversed(orig_shape):
            cols *= int(d)
            if cols >= 128:
                break
        too_wide = cols * itemsize > tile_bytes          # one row > tile budget
        too_flat = (n // cols) < sublane_min and n * itemsize > _SINGLE_BLOCK_BYTES
        use_pad = too_wide or too_flat                   # pathological shapes only

    pad_tail = 0
    if not use_pad:
        rows = n // cols
        x2d = x.reshape(rows, cols)
    else:
        # Rare fallback (e.g. enormous prime-ish trailing dim): padded copy.
        cols = 128
        rows = pl.cdiv(n, cols)
        pad_tail = rows * cols - n
        x2d = jnp.pad(x.reshape(-1), (0, pad_tail)).reshape(rows, cols)

    total_bytes = rows * cols * itemsize
    io_aliases = {0: 0} if donate else {}

    if total_bytes <= _SINGLE_BLOCK_BYTES:
        # ---- Small input: single whole-array block, no grid/pipeline. ----
        out2d = pl.pallas_call(
            _relu_kernel,
            out_shape=jax.ShapeDtypeStruct((rows, cols), dtype),
            input_output_aliases=io_aliases,
        )(x2d)
    else:
        # ---- Tiled streaming path. ----
        row_bytes = cols * itemsize
        budget_rows = max(
            sublane_min,
            (tile_bytes // row_bytes) // sublane_min * sublane_min,
        )
        # Minimum-grid-length guard: keep >= _MIN_GRID_STEPS steps so both
        # v7x TensorCores stay balanced and the pipeline hits steady state.
        steps_cap_rows = max(
            sublane_min,
            (rows // _MIN_GRID_STEPS) // sublane_min * sublane_min,
        )
        tr = min(budget_rows, steps_cap_rows)
        grid = (pl.cdiv(rows, tr),)  # partial last row-block handled by Pallas

        out2d = pl.pallas_call(
            _relu_kernel,
            out_shape=jax.ShapeDtypeStruct((rows, cols), dtype),
            grid_spec=pltpu.PrefetchScalarGridSpec(
                num_scalar_prefetch=0,
                grid=grid,
                in_specs=[pl.BlockSpec((tr, cols), lambda i: (i, 0))],
                out_specs=pl.BlockSpec((tr, cols), lambda i: (i, 0)),
            ),
            input_output_aliases=io_aliases,
            compiler_params=pltpu.CompilerParams(
                # Parallel row axis: free on v5e/v6e, ~2x on v7x's 2 TCs.
                dimension_semantics=("parallel",),
                # Headroom beyond v5e's 16 MiB default; within v6e/v7x scoped.
                vmem_limit_bytes=32 * 1024 * 1024,
            ),
        )(x2d)

    if pad_tail:
        return out2d.reshape(-1)[:n].reshape(orig_shape)
    return out2d.reshape(orig_shape)


# --------------------------------------------------------------------------
# Module semantics: calibrate / optimal_replacer (plain JAX) + custom_vjp so
# the backward is the quantized surrogate gradient, not vanilla ReLU'.
# --------------------------------------------------------------------------
def _calibrate_relu(bits=8, ranges=(-1.0, 1.0), dtype=jnp.float32):
    """JAX port of calibrate(nn.ReLU(), bits, ranges)."""
    if bits < 1:
        raise ValueError("Num of bits must be equal or more 1")
    if ranges[1] <= ranges[0]:
        raise ValueError("The right border of the interval must be greater "
                         "than the left one")
    steps = 2 ** bits
    s = (ranges[1] - ranges[0]) / steps
    pts = [ranges[0] + i * s for i in range(steps)] + [ranges[1]]
    q = jnp.asarray(pts, dtype=dtype)
    return q, jnp.maximum(q, jnp.zeros((), dtype=dtype))


def _optimal_replacer(x, quants, vals):
    """JAX port of optimal_replacer: sequential piecewise replacement."""
    q = jnp.asarray(quants).astype(x.dtype)
    v = jnp.asarray(vals).astype(x.dtype)
    k = int(q.shape[0])
    r = x
    for i in range(k):
        lo = jnp.asarray(-10000.0, x.dtype) if i == 0 else q[i]
        hi = jnp.asarray(10000.0, x.dtype) if i >= k - 1 else q[i + 1]
        r = jnp.where((r > lo) & (r <= hi), v[i], r)
    return r


@jax.custom_vjp
def _final_step_func(x, quants, vals):
    # forward(): plain ReLU -- quants/vals only shape the backward.
    return _relu_forward(x)


def _final_step_fwd(x, quants, vals):
    return _relu_forward(x), (x, quants, vals)


def _final_step_bwd(res, g):
    x, quants, vals = res
    r = _optimal_replacer(x, quants, vals)
    return (r * g).astype(x.dtype), jnp.zeros_like(quants), jnp.zeros_like(vals)


_final_step_func.defvjp(_final_step_fwd, _final_step_bwd)


def final_qrelu(x, quants=None, vals=None):
    """FinalQRelu forward (Pallas ReLU) with quantized surrogate backward.

    Mirrors finalstepfunc: if quants/vals are None, an 8-bit calibration of
    ReLU over (-1, 1) is used for the backward surrogate.
    """
    if quants is None or vals is None:
        quants, vals = _calibrate_relu(bits=8, ranges=(-1.0, 1.0), dtype=x.dtype)
    quants = jnp.asarray(quants).astype(x.dtype)
    vals = jnp.asarray(vals).astype(x.dtype)
    return _final_step_func(x, quants, vals)


if __name__ == "__main__":
    key = jax.random.PRNGKey(0)

    # Small NCHW activation, consistent with the module's conv-style usage.
    x = jax.random.normal(key, (2, 4, 16, 16), dtype=jnp.float32)

    # Deterministic "parameters" matching the module defaults
    # (quants=tensor([0]), vals=tensor([0])) -- only used by the backward.
    quants = jnp.array([0.0], dtype=jnp.float32)
    vals = jnp.array([0.0], dtype=jnp.float32)

    y = jax.block_until_ready(final_qrelu(x, quants, vals))
    ref = jnp.maximum(x, 0.0)
    assert y.shape == x.shape and y.dtype == x.dtype
    assert jnp.allclose(y, ref), "mismatch vs ReLU reference (single-block path)"

    # Tiled streaming path (8 MiB f32 activation).
    x_big = jax.random.normal(jax.random.PRNGKey(1), (16, 32, 64, 64),
                              dtype=jnp.float32)
    y_big = jax.block_until_ready(final_qrelu(x_big, quants, vals))
    assert jnp.allclose(y_big, jnp.maximum(x_big, 0.0)), \
        "mismatch vs ReLU reference (tiled path)"

    # Non-multiple-of-128 element count: copy-free trailing-dim-collapse path
    # (no pad / slice HBM passes).
    x_odd = jax.random.normal(jax.random.PRNGKey(2), (2, 3, 17, 17),
                              dtype=jnp.float32)
    y_odd = jax.block_until_ready(final_qrelu(x_odd, quants, vals))
    assert jnp.allclose(y_odd, jnp.maximum(x_odd, 0.0)), \
        "mismatch vs ReLU reference (non-divisible path)"

    # Quantized surrogate backward (module's defining behavior).
    q3, v3 = _calibrate_relu(bits=3, ranges=(-1.0, 1.0), dtype=jnp.float32)
    g = jax.grad(lambda t: final_qrelu(t, q3, v3).sum())(x)
    g = jax.block_until_ready(g)
    g_ref = _optimal_replacer(x, q3, v3)
    assert jnp.allclose(g, g_ref), "mismatch vs quantized surrogate gradient"

    print("KERNEL_OK")
</pallas_src>

<mosaic_0001>
module attributes {stable_mosaic.version = 11 : i64} {
  func.func @_relu_kernel(%arg0: memref<1x2048xf32, #tpu.memory_space<vmem>>, %arg1: memref<1x2048xf32, #tpu.memory_space<vmem>>) attributes {dimension_semantics = [], scalar_prefetch = 0 : i64, scratch_operands = 0 : i64, tpu.core_type = #tpu.core_type<tc>} {
    %c0 = arith.constant 0 : index
    %c0_0 = arith.constant 0 : index
    %0 = vector.load %arg0[%c0, %c0_0] : memref<1x2048xf32, #tpu.memory_space<vmem>>, vector<1x2048xf32>
    %cst = arith.constant 0.000000e+00 : f32
    %1 = vector.broadcast %cst : f32 to vector<1x2048xf32>
    %2 = arith.maximumf %0, %1 : vector<1x2048xf32>
    %c0_1 = arith.constant 0 : index
    %c0_2 = arith.constant 0 : index
    %3 = vector.load %arg1[%c0_1, %c0_2] : memref<1x2048xf32, #tpu.memory_space<vmem>>, vector<1x2048xf32>
    tpu.vector_store %arg1[%c0_1, %c0_2], %2 {strides = array<i32>} : memref<1x2048xf32, #tpu.memory_space<vmem>>, vector<1x2048xf32>,
    return
  }
}

</mosaic_0001>

<bundles_post_ra>
// kernel: tpu_custom_call.1
= control target key start
LH: loop header
LB: loop body
LE: loop exit
PB: predicated region body
PF: predicated region fallthrough
CT: control target
= control target key end

     0   :  { %6 = vsyncpa [#allocation3], 0  ;;  %s118_s0 = inlined_call_operand.hbm [shape: f32[1,2048], index: 0, kind: input, shape index: {}]   ;;  %s119_s1 = inlined_call_operand.hbm [shape: f32[1,2048], index: 1, kind: output, shape index: {}]  }
   0x1   :  { %7 = vsyncpa [#allocation4], 0  ;;  %s13_s8 = sshll.u32 %s118_s0, 4  ;;  %s100_s9 = smov [#allocation2]   ;;  %s14_s8 = int_to_ptr.hbm [resolvable:$true] %s13_s8 }
   0x2   :  { %s15_s10 = sshll.u32 %s100_s9, 4  ;;  %s16_s10 = int_to_ptr.vmem [resolvable:$true] %s15_s10 }
   0x3   :  { %18 = dma.hbm_to_vmem [thread:$0]  %s14_s8, 256, %s16_s10, [#allocation3]  }
   0x4   :  { %96 = dma.done.wait [#allocation3], 256  }
   0x5   :  { %97 = vsyncadd [#allocation3], 4294967040  ;;  %s101_s11 = smov [#allocation5]   ;;  %s36_s15 = sshll.u32 %s119_s1, 4  ;;  %v23_v0 = vld [vmem:[#allocation2] sm:$0xff]  ;;  %v24_v1 = vld [vmem:[#allocation2 + $0x8] sm:$0xff]  ;;  %s37_s15 = int_to_ptr.hbm [resolvable:$true] %s36_s15 }
   0x6   :  { %s34_s12 = sshll.u32 %s101_s11, 4  ;;  %v25_v2 = vmax.f32 %v23_v0, 0.0  ;;  %v26_v3 = vmax.f32 %v24_v1, 0.0  ;;  %s35_s12 = int_to_ptr.vmem [resolvable:$true] %s34_s12 }
   0x8   :  { %27 = vst [vmem:[#allocation5] sm:$0xff] %v25_v2 }
   0x9   :  { %28 = vst [vmem:[#allocation5 + $0x8] sm:$0xff] %v26_v3 }
   0xa   :  { %39 = dma.vmem_to_hbm [thread:$0]  %s35_s12, 256, %s37_s15, [#allocation4]  }
   0xb   :  { %98 = dma.done.wait [#allocation4], 256  }
   0xc   :  { %99 = vsyncadd [#allocation4], 4294967040 }
   0xd   :  { %44 = vsyncpa [#allocation3], 1 }
   0xe   :  { %45 = vsyncpa [#allocation4], 1 }

</bundles_post_ra>
